<compile_context>
chip_gen: v7x
topology: tpu7x:2x2x1
jax: 0.10.0
libtpu: 0.0.40
codegen_flags: <defaults>
</compile_context>

<pallas_src>
import jax
import jax.numpy as jnp
from jax.experimental import pallas as pl
from jax.experimental.pallas import tpu as pltpu


def _pos_embed_kernel(lhs_ref, sel_ref, o_ref):
    # lhs_ref : (2F, W+H)   block-diagonal [[col_emb[:W].T, 0], [0, row_emb[:H].T]]
    # sel_ref : (W+H, H*W)  stacked 0/1 selection masks [sx ; sy]
    #                        sx[w, k] = (k % W == w),  sy[h, k] = (k // W == h)
    # o_ref   : (Bt, 2F, H*W) lane-dense position map for Bt batch elements.
    #
    # One fused MXU matmul produces the whole (2F, H*W) map:
    #   out[c,     k] = col[c, k % W]    (x embedding, repeated over rows)
    #   out[F + c, k] = row[c, k // W]   (y embedding, repeated over cols)
    pos = jnp.dot(lhs_ref[...], sel_ref[...],
                  precision=jax.lax.Precision.HIGHEST,
                  preferred_element_type=jnp.float32)
    # Replicate across the batch tile with full-width, unmasked stores.
    for b in range(o_ref.shape[0]):          # Bt is static -> unrolled
        o_ref[b, :, :] = pos


def position_embedding_learned(x, col_weight, row_weight):
    """x: (B, C, H, W) NCHW input (only shape/batch used, as in torch).
    col_weight, row_weight: (50, F) embedding tables (float32).
    Returns pos: (B, 2*F, H, W) float32, matching the PyTorch module."""
    B = int(x.shape[0])
    H, W = int(x.shape[-2]), int(x.shape[-1])
    F = int(col_weight.shape[-1])
    HW = H * W
    assert W <= col_weight.shape[0] and H <= row_weight.shape[0], \
        "spatial size exceeds the 50-entry embedding tables (as in the torch module)"

    # ---- batch-invariant precompute (tiny tensors, done once in XLA) --------
    col_t = jnp.transpose(col_weight[:W]).astype(jnp.float32)   # (F, W)
    row_t = jnp.transpose(row_weight[:H]).astype(jnp.float32)   # (F, H)

    # Block-diagonal LHS (2F, W+H): [[col_t, 0], [0, row_t]]
    lhs = jnp.zeros((2 * F, W + H), jnp.float32)
    lhs = lhs.at[:F, :W].set(col_t)
    lhs = lhs.at[F:, W:].set(row_t)

    # Stacked 0/1 selection masks (W+H, HW), resident in VMEM for the whole grid.
    k = jnp.arange(HW, dtype=jnp.int32)
    sx = (k[None, :] % W == jnp.arange(W, dtype=jnp.int32)[:, None]).astype(jnp.float32)
    sy = (k[None, :] // W == jnp.arange(H, dtype=jnp.int32)[:, None]).astype(jnp.float32)
    sel = jnp.concatenate([sx, sy], axis=0)                      # (W+H, HW)

    # ---- pick a batch tile Bt (largest divisor of B <= 4 under a VMEM budget)
    # Double-buffered output block is 2 * Bt * 2F * HW * 4 bytes; keep it well
    # under the 32 MiB default scoped VMEM (valid on v5e/v6e/v7x defaults).
    vmem_budget = 24 << 20
    Bt = 1
    for cand in (4, 3, 2):
        if B % cand == 0 and 2 * cand * (2 * F) * HW * 4 <= vmem_budget:
            Bt = cand
            break
    # For very large H*W at 2F>=256, Bt=1 still fits; a lane-axis (H-tile) grid
    # dimension would be the next step on v7x's 64 MiB VMEM — not needed at
    # DETR scales (H, W <= 50).

    pos_flat = pl.pallas_call(
        _pos_embed_kernel,
        out_shape=jax.ShapeDtypeStruct((B, 2 * F, HW), jnp.float32),
        grid=(B // Bt,),
        in_specs=[
            pl.BlockSpec((2 * F, W + H), lambda b: (0, 0)),   # constant -> DMA'd once
            pl.BlockSpec((W + H, HW), lambda b: (0, 0)),      # constant -> DMA'd once
        ],
        out_specs=pl.BlockSpec((Bt, 2 * F, HW), lambda b: (b, 0, 0)),
        compiler_params=pltpu.CompilerParams(
            dimension_semantics=("parallel",)),               # megacore-safe on v7x
    )(lhs, sel)

    # (B, 2F, H*W) -> (B, 2F, H, W): contiguous split of the last dim — free.
    return pos_flat.reshape(B, 2 * F, H, W)


def _reference(x, col_weight, row_weight):
    """Pure-JAX reimplementation of the torch forward for verification."""
    B = x.shape[0]
    H, W = x.shape[-2], x.shape[-1]
    x_emb = col_weight[jnp.arange(W)]                       # (W, F)
    y_emb = row_weight[jnp.arange(H)]                       # (H, F)
    pos = jnp.concatenate(
        [
            jnp.broadcast_to(x_emb[None, :, :], (H, W, x_emb.shape[-1])),
            jnp.broadcast_to(y_emb[:, None, :], (H, W, y_emb.shape[-1])),
        ],
        axis=-1,
    )                                                       # (H, W, 2F)
    pos = jnp.transpose(pos, (2, 0, 1))[None]               # (1, 2F, H, W)
    return jnp.broadcast_to(pos, (B,) + pos.shape[1:])


if __name__ == "__main__":
    B, C, H, W = 2, 4, 16, 16
    num_pos_feats = 32  # consistent with nn.Embedding(50, num_pos_feats)

    key = jax.random.PRNGKey(0)
    k_x, k_row, k_col = jax.random.split(key, 3)

    x = jax.random.normal(k_x, (B, C, H, W), dtype=jnp.float32)
    # nn.init.uniform_ -> U[0, 1)
    row_weight = jax.random.uniform(k_row, (50, num_pos_feats), dtype=jnp.float32)
    col_weight = jax.random.uniform(k_col, (50, num_pos_feats), dtype=jnp.float32)

    pos = jax.jit(position_embedding_learned)(x, col_weight, row_weight)
    pos = jax.block_until_ready(pos)

    ref = _reference(x, col_weight, row_weight)
    assert pos.shape == (B, 2 * num_pos_feats, H, W), pos.shape
    # Selection via an f32 MXU matmul with precision=HIGHEST against exact 0/1
    # masks; residual f32-split error is <~1e-5, while a wrong selection would
    # be O(0.1..1) off for U[0,1) tables.
    max_err = float(jnp.max(jnp.abs(pos - ref)))
    assert max_err <= 1e-4, f"mismatch vs reference: {max_err}"

    print("KERNEL_OK")
</pallas_src>

<mosaic_0001>
module attributes {stable_mosaic.version = 11 : i64} {
  func.func @_pos_embed_kernel(%arg0: i32, %arg1: memref<64x32xf32, #tpu.memory_space<vmem>>, %arg2: memref<32x256xf32, #tpu.memory_space<vmem>>, %arg3: memref<2x64x256xf32, #tpu.memory_space<vmem>>) attributes {dimension_semantics = [#tpu.dimension_semantics<parallel>], iteration_bounds = array<i64: 1>, scalar_prefetch = 0 : i64, scratch_operands = 0 : i64, tpu.core_type = #tpu.core_type<tc>, window_params = [{pipeline_mode = #tpu.pipeline_mode<synchronous>, transform_indices = @transform_0, window_bounds = array<i64: 64, 32>}, {pipeline_mode = #tpu.pipeline_mode<synchronous>, transform_indices = @transform_1, window_bounds = array<i64: 32, 256>}, {transform_indices = @transform_2, window_bounds = array<i64: 2, 64, 256>}]} {
    %c0 = arith.constant 0 : index
    %c0_0 = arith.constant 0 : index
    %0 = vector.load %arg1[%c0, %c0_0] : memref<64x32xf32, #tpu.memory_space<vmem>>, vector<64x32xf32>
    %c0_1 = arith.constant 0 : index
    %c0_2 = arith.constant 0 : index
    %1 = vector.load %arg2[%c0_1, %c0_2] : memref<32x256xf32, #tpu.memory_space<vmem>>, vector<32x256xf32>
    %cst = arith.constant dense<0.000000e+00> : vector<64x256xf32>
    %2 = tpu.matmul %0, %1, %cst {dimension_numbers = #tpu.dot_dimension_numbers<[1], [0], [0], [1], [0, 0, 1, 1], [], []>, precision = #tpu.contract_precision<fp32>} : vector<64x32xf32>, vector<32x256xf32>, vector<64x256xf32> -> vector<64x256xf32>
    %c0_3 = arith.constant 0 : index
    %c0_4 = arith.constant 0 : index
    %c0_5 = arith.constant 0 : index
    %3 = vector.load %arg3[%c0_3, %c0_4, %c0_5] : memref<2x64x256xf32, #tpu.memory_space<vmem>>, vector<1x64x256xf32>
    %4 = vector.shape_cast %3 : vector<1x64x256xf32> to vector<64x256xf32>
    %5 = vector.shape_cast %2 : vector<64x256xf32> to vector<1x64x256xf32>
    tpu.vector_store %arg3[%c0_3, %c0_4, %c0_5], %5 {strides = array<i32>} : memref<2x64x256xf32, #tpu.memory_space<vmem>>, vector<1x64x256xf32>,
    %c1 = arith.constant 1 : index
    %c0_6 = arith.constant 0 : index
    %c0_7 = arith.constant 0 : index
    %6 = vector.load %arg3[%c1, %c0_6, %c0_7] : memref<2x64x256xf32, #tpu.memory_space<vmem>>, vector<1x64x256xf32>
    %7 = vector.shape_cast %6 : vector<1x64x256xf32> to vector<64x256xf32>
    %8 = vector.shape_cast %2 : vector<64x256xf32> to vector<1x64x256xf32>
    tpu.vector_store %arg3[%c1, %c0_6, %c0_7], %8 {strides = array<i32>} : memref<2x64x256xf32, #tpu.memory_space<vmem>>, vector<1x64x256xf32>,
    return
  }
  func.func @transform_0(%arg0: i32) -> (i32, i32) {
    %c0_i32 = arith.constant 0 : i32
    %c0_i32_0 = arith.constant 0 : i32
    %c0_i32_1 = arith.constant 0 : i32
    return %c0_i32, %c0_i32_0 : i32, i32
  }
  func.func @transform_1(%arg0: i32) -> (i32, i32) {
    %c0_i32 = arith.constant 0 : i32
    %c0_i32_0 = arith.constant 0 : i32
    %c0_i32_1 = arith.constant 0 : i32
    return %c0_i32, %c0_i32_0 : i32, i32
  }
  func.func @transform_2(%arg0: i32) -> (i32, i32, i32) {
    %c0_i32 = arith.constant 0 : i32
    %c0_i32_0 = arith.constant 0 : i32
    %c0_i32_1 = arith.constant 0 : i32
    return %arg0, %c0_i32, %c0_i32_0 : i32, i32, i32
  }
}

</mosaic_0001>

<bundles_post_ra>
// kernel: position_embedding_learned.1
= control target key start
LH: loop header
LB: loop body
LE: loop exit
PB: predicated region body
PF: predicated region fallthrough
CT: control target
= control target key end

     0   :  { %v1120_v3 = vmov 0.0   ;;  %vm27_vm0 = vcmask 261120   ;;  %s1484_s1 = inlined_call_operand.vmem [shape: f32[32,256], index: 1, kind: input, shape index: {}]   ;;  %s1485_s0 = inlined_call_operand.vmem [shape: f32[64,32], index: 0, kind: input, shape index: {}]   ;;  %s1486_s2 = inlined_call_operand.vmem [shape: f32[2,64,256], index: 2, kind: output, shape index: {}]  }
   0x1   :  { %v20_v0 = vld [vmem:[%s1484_s1 + $0x8] sm:$0xff]  ;;  %v22_v1 = vld [vmem:[%s1484_s1 + $0x18] sm:$0xff]  ;;  %v19_v2 = vld [vmem:[%s1484_s1] sm:$0xff]  ;;  %124 = vmatprep.mubr.f32.mxu1 %v1120_v3  ;;  %591 = vmatprep.mubr.f32.mxu0 %v1120_v3 }
   0x2   :  { %v52_v4 = vand.u32 4294901760, %v20_v0  ;;  %v56_v5 = vand.u32 4294901760, %v22_v1  ;;  %v21_v6 = vld [vmem:[%s1484_s1 + $0x10] sm:$0xff]  ;;  %v54_v7 = vand.u32 4294901760, %v19_v2  ;;  %v24_v8 = vld [vmem:[%s1484_s1 + $0x28] sm:$0xff]  ;;  %v26_v9 = vld [vmem:[%s1484_s1 + $0x38] sm:$0xff] }
   0x3   :  { %v58_v10 = vand.u32 4294901760, %v21_v6  ;;  %v60_v11 = vand.u32 4294901760, %v24_v8  ;;  %v64_v12 = vand.u32 4294901760, %v26_v9  ;;  %v23_v13 = vld [vmem:[%s1484_s1 + $0x20] sm:$0xff]  ;;  %v25_v14 = vld [vmem:[%s1484_s1 + $0x30] sm:$0xff]  ;;  %v12_v32 = vld [vmem:[%s1485_s0 + $0x8] sm:$0xff] }
   0x4   :  { %v11_v15 = vld [vmem:[%s1485_s0] sm:$0xff]  ;;  %v1165_v16 = vpack.c.bf16 %v56_v5, %v52_v4  ;;  %v1167_v17 = vsub.f32 %v20_v0, %v52_v4  ;;  %v1169_v18 = vsub.f32 %v22_v1, %v56_v5  ;;  %v1171_v19 = vsub.f32 %v19_v2, %v54_v7  ;;  %v13_v41 = vld [vmem:[%s1485_s0 + $0x10] sm:$0xff]  ;;  %v14_v42 = vld [vmem:[%s1485_s0 + $0x18] sm:$0xff] }
   0x5   :  { %v1173_v20 = vpack.c.bf16 %v58_v10, %v54_v7  ;;  %v1175_v21 = vsub.f32 %v21_v6, %v58_v10  ;;  %v1177_v22 = vpack.c.bf16 %v64_v12, %v60_v11  ;;  %v1179_v23 = vsub.f32 %v24_v8, %v60_v11  ;;  %v15_v51 = vld [vmem:[%s1485_s0 + $0x20] sm:$0xff] }
   0x6   :  { %992 = vmatprep.subr.bf16.mxu1 %v1165_v16  ;;  %1016 = vmatprep.subr.bf16.mxu0 %v1165_v16  ;;  %v1183_v24 = vsub.f32 %v26_v9, %v64_v12  ;;  %v62_v25 = vand.u32 4294901760, %v23_v13  ;;  %v66_v26 = vand.u32 4294901760, %v25_v14  ;;  %v29_v27 = vsel %vm27_vm0, %v11_v15, 0 }
   0x7   :  { %994 = vmatpush1.bf16.msra.mxu1 %v1173_v20  ;;  %1018 = vmatpush1.bf16.msra.mxu0 %v1173_v20  ;;  %v1188_v28 = vand.u32 4294901760, %v29_v27  ;;  %v215_v29 = vand.u32 4294901760, %v1167_v17  ;;  %v227_v30 = vand.u32 4294901760, %v1169_v18  ;;  %v221_v31 = vand.u32 4294901760, %v1171_v19 }
   0x8   :  { %996 = vmatprep.subr.bf16.mxu1 %v1177_v22  ;;  %1020 = vmatprep.subr.bf16.mxu0 %v1177_v22  ;;  %v1198_v33 = vpack.c.bf16 %v66_v26, %v62_v25  ;;  %v1200_v34 = vsub.f32 %v23_v13, %v62_v25  ;;  %v1202_v35 = vsub.f32 %v25_v14, %v66_v26  ;;  %v233_v36 = vand.u32 4294901760, %v1175_v21  ;;  %v16_v26 = vld [vmem:[%s1485_s0 + $0x28] sm:$0xff] }
   0x9   :  { %v1206_v37 = vsub.f32 %v29_v27, %v1188_v28  ;;  %v216_v38 = vsub.f32 %v1167_v17, %v215_v29  ;;  %v228_v39 = vsub.f32 %v1169_v18, %v227_v30  ;;  %v1023_v40 = vpack.c.bf16 %v227_v30, %v215_v29 }
   0xa   :  { %v222_v43 = vsub.f32 %v1171_v19, %v221_v31  ;;  %v234_v44 = vsub.f32 %v1175_v21, %v233_v36  ;;  %v1025_v45 = vpack.c.bf16 %v233_v36, %v221_v31  ;;  %v32_v46 = vsel %vm27_vm0, %v12_v32, 0 }
   0xb   :  { %998 = vmatpush1.bf16.msra.mxu1 %v1198_v33  ;;  %1022 = vmatpush1.bf16.msra.mxu0 %v1198_v33  ;;  %v127_v47 = vand.u32 4294901760, %v1206_v37  ;;  %v217_v48 = vand.u32 4294901760, %v216_v38  ;;  %v229_v49 = vand.u32 4294901760, %v228_v39  ;;  %v1222_v50 = vand.u32 4294901760, %v32_v46  ;;  %v17_v39 = vld [vmem:[%s1485_s0 + $0x30] sm:$0xff] }
   0xc   :  { %1024 = vmatprep.subr.bf16.mxu0 %v1023_v40  ;;  %v223_v52 = vand.u32 4294901760, %v222_v43  ;;  %v235_v53 = vand.u32 4294901760, %v234_v44  ;;  %v35_v54 = vsel %vm27_vm0, %v13_v41, 0  ;;  %v38_v55 = vsel %vm27_vm0, %v14_v42, 0  ;;  %v18_v40 = vld [vmem:[%s1485_s0 + $0x38] sm:$0xff] }
   0xd   :  { %v128_v56 = vsub.f32 %v1206_v37, %v127_v47  ;;  %v999_v57 = vpack.c.bf16 %v229_v49, %v217_v48  ;;  %v1231_v58 = vsub.f32 %v32_v46, %v1222_v50  ;;  %v1233_v59 = vand.u32 4294901760, %v35_v54 }
   0xe   :  { %595 = vmatmul.mubr.f32.vlgmr.msra.gmra.mrb[0].mxu0 %v127_v47  ;;  %v1001_v60 = vpack.c.bf16 %v235_v53, %v223_v52  ;;  %v1235_v61 = vand.u32 4294901760, %v38_v55  ;;  %v41_v62 = vsel %vm27_vm0, %v15_v51, 0  ;;  %v239_v63 = vand.u32 4294901760, %v1179_v23 }
   0xf   :  { %v129_v0 = vand.u32 4294901760, %v128_v56  ;;  %1000 = vmatprep.subr.bf16.mxu1 %v999_v57  ;;  %1026 = vmatpush1.bf16.msra.mxu0 %v1025_v45  ;;  %v138_v1 = vand.u32 4294901760, %v1231_v58  ;;  %v1241_v2 = vsub.f32 %v35_v54, %v1233_v59  ;;  %v1243_v4 = vand.u32 4294901760, %v41_v62 }
  0x10   :  { %600 = vmatprep.mubr.f32.mxu0 %v1120_v3  ;;  %v1247_v5 = vsub.f32 %v38_v55, %v1235_v61  ;;  %v240_v6 = vsub.f32 %v1179_v23, %v239_v63  ;;  %v251_v7 = vand.u32 4294901760, %v1183_v24  ;;  %v245_v8 = vand.u32 4294901760, %v1200_v34 }
  0x11   :  { %130 = vmatmul.mubr.f32.vlgmr.msra.gmra.mrb[0].mxu1 %v129_v0  ;;  %v139_v9 = vsub.f32 %v1231_v58, %v138_v1  ;;  %v149_v10 = vand.u32 4294901760, %v1241_v2  ;;  %v1255_v11 = vsub.f32 %v41_v62, %v1243_v4  ;;  %v257_v12 = vand.u32 4294901760, %v1202_v35 }
  0x12   :  { %1002 = vmatpush1.bf16.msra.mxu1 %v1001_v60  ;;  %135 = vmatprep.mubr.f32.mxu1 %v1120_v3  ;;  %v160_v13 = vand.u32 4294901760, %v1247_v5  ;;  %v241_v14 = vand.u32 4294901760, %v240_v6  ;;  %v252_v15 = vsub.f32 %v1183_v24, %v251_v7  ;;  %v1027_v25 = vpack.c.bf16 %v251_v7, %v239_v63 }
  0x13   :  { %v140_v27 = vand.u32 4294901760, %v139_v9  ;;  %604 = vmatmul.mubr.f32.gmra.mrb[2].mxu0 %v138_v1  ;;  %v150_v29 = vsub.f32 %v1241_v2, %v149_v10  ;;  %v246_v30 = vsub.f32 %v1200_v34, %v245_v8  ;;  %v171_v31 = vand.u32 4294901760, %v1255_v11 }
  0x14   :  { %609 = vmatprep.mubr.f32.mxu0 %v1120_v3  ;;  %v253_v32 = vand.u32 4294901760, %v252_v15  ;;  %1028 = vmatprep.subr.bf16.mxu0 %v1027_v25  ;;  %v258_v36 = vsub.f32 %v1202_v35, %v257_v12  ;;  %v1029_v38 = vpack.c.bf16 %v257_v12, %v245_v8  ;;  %v161_v42 = vsub.f32 %v1247_v5, %v160_v13 }
  0x15   :  { %141 = vmatmul.mubr.f32.gmra.mrb[2].mxu1 %v140_v27  ;;  %v151_v41 = vand.u32 4294901760, %v150_v29  ;;  %v247_v43 = vand.u32 4294901760, %v246_v30  ;;  %v44_v44 = vsel %vm27_vm0, %v16_v26, 0  ;;  %v47_v48 = vsel %vm27_vm0, %v17_v39, 0 }
  0x16   :  { %146 = vmatprep.mubr.f32.mxu1 %v1120_v3  ;;  %v1003_v45 = vpack.c.bf16 %v253_v32, %v241_v14  ;;  %v259_v46 = vand.u32 4294901760, %v258_v36  ;;  %1030 = vmatpush1.bf16.msra.mxu0 %v1029_v38  ;;  %v1278_v47 = vand.u32 4294901760, %v44_v44  ;;  %v50_v49 = vsel %vm27_vm0, %v18_v40, 0 }
  0x17   :  { %613 = vmatmul.mubr.f32.gmra.mrb[4].mxu0 %v149_v10  ;;  %v1007_v51 = vpack.c.bf16 %v1169_v18, %v1167_v17  ;;  %1032 = vmatprep.subr.bf16.mxu0 %v1165_v16  ;;  %v1289_v54 = vand.u32 4294901760, %v47_v48  ;;  %v162_v55 = vand.u32 4294901760, %v161_v42  ;;  %v172_v56 = vsub.f32 %v1255_v11, %v171_v31 }
  0x18   :  { %618 = vmatprep.mubr.f32.mxu0 %v1120_v3  ;;  %1004 = vmatprep.subr.bf16.mxu1 %v1003_v45  ;;  %v1005_v52 = vpack.c.bf16 %v259_v46, %v247_v43  ;;  %v1287_v53 = vsub.f32 %v44_v44, %v1278_v47  ;;  %v1292_v57 = vand.u32 4294901760, %v50_v49  ;;  %v1009_v10 = vpack.c.bf16 %v1175_v21, %v1171_v19 }
  0x19   :  { %152 = vmatmul.mubr.f32.gmra.mrb[4].mxu1 %v151_v41  ;;  %v1297_v17 = vsub.f32 %v47_v48, %v1289_v54  ;;  %v173_v18 = vand.u32 4294901760, %v172_v56  ;;  %v1011_v12 = vpack.c.bf16 %v1183_v24, %v1179_v23 }
  0x1a   :  { %157 = vmatprep.mubr.f32.mxu1 %v1120_v3  ;;  %1006 = vmatpush1.bf16.msra.mxu1 %v1005_v52  ;;  %v182_v16 = vand.u32 4294901760, %v1287_v53  ;;  %v1303_v63 = vsub.f32 %v50_v49, %v1292_v57 }
  0x1b   :  { %622 = vmatmul.mubr.f32.gmra.mrb[6].mxu0 %v160_v13  ;;  %1008 = vmatprep.subr.bf16.mxu1 %v1007_v51  ;;  %v193_v62 = vand.u32 4294901760, %v1297_v17  ;;  %v1013_v13 = vpack.c.bf16 %v1202_v35, %v1200_v34 }
  0x1c   :  { %627 = vmatprep.mubr.f32.mxu0 %v1120_v3  ;;  %v183_v60 = vsub.f32 %v1287_v53, %v182_v16  ;;  %v204_v6 = vand.u32 4294901760, %v1303_v63 }
  0x1d   :  { %163 = vmatmul.mubr.f32.gmra.mrb[6].mxu1 %v162_v55  ;;  %v194_v1 = vsub.f32 %v1297_v17, %v193_v62 }
  0x1e   :  { %168 = vmatprep.mubr.f32.mxu1 %v1120_v3  ;;  %v184_v0 = vand.u32 4294901760, %v183_v60  ;;  %v205_v8 = vsub.f32 %v1303_v63, %v204_v6 }
  0x1f   :  { %631 = vmatmul.mubr.f32.gmra.mrb[8].mxu0 %v171_v31  ;;  %v195_v7 = vand.u32 4294901760, %v194_v1 }
  0x20   :  { %636 = vmatprep.mubr.f32.mxu0 %v1120_v3  ;;  %v206_v9 = vand.u32 4294901760, %v205_v8 }
  0x21   :  { %174 = vmatmul.mubr.f32.gmra.mrb[8].mxu1 %v173_v18 }
  0x22   :  { %179 = vmatprep.mubr.f32.mxu1 %v1120_v3 }
  0x23   :  { %640 = vmatmul.mubr.f32.gmra.mrb[10].mxu0 %v182_v16 }
  0x24   :  { %645 = vmatprep.mubr.f32.mxu0 %v1120_v3 }
  0x25   :  { %185 = vmatmul.mubr.f32.gmra.mrb[10].mxu1 %v184_v0 }
  0x26   :  { %190 = vmatprep.mubr.f32.mxu1 %v1120_v3 }
  0x27   :  { %649 = vmatmul.mubr.f32.gmra.mrb[12].mxu0 %v193_v62 }
  0x28   :  { %654 = vmatprep.mubr.f32.mxu0 %v1120_v3 }
  0x29   :  { %196 = vmatmul.mubr.f32.gmra.mrb[12].mxu1 %v195_v7 }
  0x2a   :  { %201 = vmatprep.mubr.f32.mxu1 %v1120_v3 }
  0x2b   :  { %658 = vmatmul.mubr.f32.gmra.mrb[14].mxu0 %v204_v6 }
  0x2c   :  { %752 = vmatprep.mubr.f32.mxu0 %v1120_v3 }
  0x2d   :  { %207 = vmatmul.mubr.f32.gmra.mrb[14].mxu1 %v206_v9 }
  0x2e   :  { %317 = vmatprep.mubr.f32.mxu1 %v1120_v3 }
  0x2f   :  { %754 = vmatmul.mubr.f32.vlgmr.msra.gmra.mrb[0].mxu0 %v1188_v28 }
  0x30   :  { %1034 = vmatpush1.bf16.msra.mxu0 %v1173_v20  ;;  %759 = vmatprep.mubr.f32.mxu0 %v1120_v3 }
  0x31   :  { %319 = vmatmul.mubr.f32.vlgmr.msra.gmra.mrb[0].mxu1 %v1188_v28  ;;  %1036 = vmatprep.subr.bf16.mxu0 %v1177_v22 }
  0x32   :  { %1010 = vmatpush1.bf16.msra.mxu1 %v1009_v10  ;;  %324 = vmatprep.mubr.f32.mxu1 %v1120_v3 }
  0x33   :  { %761 = vmatmul.mubr.f32.gmra.mrb[2].mxu0 %v1222_v50  ;;  %1012 = vmatprep.subr.bf16.mxu1 %v1011_v12 }
  0x34   :  { %766 = vmatprep.mubr.f32.mxu0 %v1120_v3  ;;  %1038 = vmatpush1.bf16.msra.mxu0 %v1198_v33 }
  0x35   :  { %326 = vmatmul.mubr.f32.gmra.mrb[2].mxu1 %v1222_v50 }
  0x36   :  { %331 = vmatprep.mubr.f32.mxu1 %v1120_v3  ;;  %1014 = vmatpush1.bf16.msra.mxu1 %v1013_v13 }
  0x37   :  { %768 = vmatmul.mubr.f32.gmra.mrb[4].mxu0 %v1233_v59 }
  0x38   :  { %773 = vmatprep.mubr.f32.mxu0 %v1120_v3 }
  0x39   :  { %333 = vmatmul.mubr.f32.gmra.mrb[4].mxu1 %v1233_v59 }
  0x3a   :  { %338 = vmatprep.mubr.f32.mxu1 %v1120_v3 }
  0x3b   :  { %775 = vmatmul.mubr.f32.gmra.mrb[6].mxu0 %v1235_v61 }
  0x3c   :  { %780 = vmatprep.mubr.f32.mxu0 %v1120_v3 }
  0x3d   :  { %340 = vmatmul.mubr.f32.gmra.mrb[6].mxu1 %v1235_v61 }
  0x3e   :  { %345 = vmatprep.mubr.f32.mxu1 %v1120_v3 }
  0x3f   :  { %782 = vmatmul.mubr.f32.gmra.mrb[8].mxu0 %v1243_v4 }
  0x40   :  { %787 = vmatprep.mubr.f32.mxu0 %v1120_v3 }
  0x41   :  { %347 = vmatmul.mubr.f32.gmra.mrb[8].mxu1 %v1243_v4 }
  0x42   :  { %352 = vmatprep.mubr.f32.mxu1 %v1120_v3 }
  0x43   :  { %789 = vmatmul.mubr.f32.gmra.mrb[10].mxu0 %v1278_v47 }
  0x44   :  { %794 = vmatprep.mubr.f32.mxu0 %v1120_v3 }
  0x45   :  { %354 = vmatmul.mubr.f32.gmra.mrb[10].mxu1 %v1278_v47 }
  0x46   :  { %359 = vmatprep.mubr.f32.mxu1 %v1120_v3 }
  0x47   :  { %796 = vmatmul.mubr.f32.gmra.mrb[12].mxu0 %v1289_v54 }
  0x48   :  { %801 = vmatprep.mubr.f32.mxu0 %v1120_v3 }
  0x49   :  { %361 = vmatmul.mubr.f32.gmra.mrb[12].mxu1 %v1289_v54 }
  0x4a   :  { %366 = vmatprep.mubr.f32.mxu1 %v1120_v3 }
  0x4b   :  { %803 = vmatmul.mubr.f32.gmra.mrb[14].mxu0 %v1292_v57 }
  0x4c   :  { %881 = vmatprep.mubr.f32.mxu0 %v1120_v3 }
  0x4d   :  { %368 = vmatmul.mubr.f32.gmra.mrb[14].mxu1 %v1292_v57 }
  0x4e   :  { %454 = vmatprep.mubr.f32.mxu1 %v1120_v3 }
  0x4f   :  { %883 = vmatmul.mubr.f32.vlgmr.msra.gmra.mrb[0].mxu0 %v1188_v28 }
  0x50   :  { %888 = vmatprep.mubr.f32.mxu0 %v1120_v3 }
  0x51   :  { %457 = vmatmul.mubr.f32.vlgmr.msra.gmra.mrb[0].mxu1 %v1206_v37 }
  0x52   :  { %462 = vmatprep.mubr.f32.mxu1 %v1120_v3 }
  0x53   :  { %890 = vmatmul.mubr.f32.gmra.mrb[2].mxu0 %v1222_v50 }
  0x54   :  { %895 = vmatprep.mubr.f32.mxu0 %v1120_v3 }
  0x55   :  { %465 = vmatmul.mubr.f32.gmra.mrb[2].mxu1 %v1231_v58 }
  0x56   :  { %470 = vmatprep.mubr.f32.mxu1 %v1120_v3 }
  0x57   :  { %897 = vmatmul.mubr.f32.gmra.mrb[4].mxu0 %v1233_v59 }
  0x58   :  { %902 = vmatprep.mubr.f32.mxu0 %v1120_v3 }
  0x59   :  { %473 = vmatmul.mubr.f32.gmra.mrb[4].mxu1 %v1241_v2 }
  0x5a   :  { %478 = vmatprep.mubr.f32.mxu1 %v1120_v3 }
  0x5b   :  { %904 = vmatmul.mubr.f32.gmra.mrb[6].mxu0 %v1235_v61 }
  0x5c   :  { %909 = vmatprep.mubr.f32.mxu0 %v1120_v3 }
  0x5d   :  { %481 = vmatmul.mubr.f32.gmra.mrb[6].mxu1 %v1247_v5 }
  0x5e   :  { %486 = vmatprep.mubr.f32.mxu1 %v1120_v3 }
  0x5f   :  { %911 = vmatmul.mubr.f32.gmra.mrb[8].mxu0 %v1243_v4 }
  0x60   :  { %916 = vmatprep.mubr.f32.mxu0 %v1120_v3 }
  0x61   :  { %489 = vmatmul.mubr.f32.gmra.mrb[8].mxu1 %v1255_v11 }
  0x62   :  { %494 = vmatprep.mubr.f32.mxu1 %v1120_v3 }
  0x63   :  { %918 = vmatmul.mubr.f32.gmra.mrb[10].mxu0 %v1278_v47 }
  0x64   :  { %923 = vmatprep.mubr.f32.mxu0 %v1120_v3 }
  0x65   :  { %497 = vmatmul.mubr.f32.gmra.mrb[10].mxu1 %v1287_v53 }
  0x66   :  { %502 = vmatprep.mubr.f32.mxu1 %v1120_v3 }
  0x67   :  { %925 = vmatmul.mubr.f32.gmra.mrb[12].mxu0 %v1289_v54 }
  0x68   :  { %930 = vmatprep.mubr.f32.mxu0 %v1120_v3 }
  0x69   :  { %505 = vmatmul.mubr.f32.gmra.mrb[12].mxu1 %v1297_v17 }
  0x6a   :  { %510 = vmatprep.mubr.f32.mxu1 %v1120_v3 }
  0x6b   :  { %932 = vmatmul.mubr.f32.gmra.mrb[14].mxu0 %v1292_v57 }
  0x6d   :  { %513 = vmatmul.mubr.f32.gmra.mrb[14].mxu1 %v1303_v63 }
 0x122   :  { %v884_v19 = vpop.f32.mrb[0].mxu0 }
 0x123   :  { %v886_v20 = vpop.f32.mrb[1].mxu0 }
 0x124   :  { %v458_v21 = vpop.f32.mrb[0].mxu1 }
 0x125   :  { %v1039_v22 = vadd.f32 %v884_v19, %v458_v21  ;;  %v460_v23 = vpop.f32.mrb[1].mxu1 }
 0x126   :  { %v1040_v24 = vadd.f32 %v886_v20, %v460_v23  ;;  %v891_v28 = vpop.f32.mrb[2].mxu0 }
 0x127   :  { %938 = vst [vmem:[%s1486_s2] sm:$0xff] %v1039_v22  ;;  %975 = vst [vmem:[%s1486_s2 + $0x80] sm:$0xff] %v1039_v22  ;;  %v893_v3 = vpop.f32.mrb[3].mxu0 }
 0x128   :  { %939 = vst [vmem:[%s1486_s2 + $0x8] sm:$0xff] %v1040_v24  ;;  %976 = vst [vmem:[%s1486_s2 + $0x88] sm:$0xff] %v1040_v24  ;;  %v466_v33 = vpop.f32.mrb[2].mxu1 }
 0x129   :  { %v1041_v34 = vadd.f32 %v891_v28, %v466_v33  ;;  %v468_v35 = vpop.f32.mrb[3].mxu1 }
 0x12a   :  { %v1042_v37 = vadd.f32 %v893_v3, %v468_v35  ;;  %v898_v50 = vpop.f32.mrb[4].mxu0 }
 0x12b   :  { %940 = vst [vmem:[%s1486_s2 + $0x10] sm:$0xff] %v1041_v34  ;;  %977 = vst [vmem:[%s1486_s2 + $0x90] sm:$0xff] %v1041_v34  ;;  %v900_v58 = vpop.f32.mrb[5].mxu0 }
 0x12c   :  { %941 = vst [vmem:[%s1486_s2 + $0x18] sm:$0xff] %v1042_v37  ;;  %978 = vst [vmem:[%s1486_s2 + $0x98] sm:$0xff] %v1042_v37  ;;  %v474_v59 = vpop.f32.mrb[4].mxu1 }
 0x12d   :  { %v1043_v61 = vadd.f32 %v898_v50, %v474_v59  ;;  %v476_v2 = vpop.f32.mrb[5].mxu1 }
 0x12e   :  { %v1044_v4 = vadd.f32 %v900_v58, %v476_v2  ;;  %v905_v5 = vpop.f32.mrb[6].mxu0 }
 0x12f   :  { %942 = vst [vmem:[%s1486_s2 + $0x20] sm:$0xff] %v1043_v61  ;;  %979 = vst [vmem:[%s1486_s2 + $0xa0] sm:$0xff] %v1043_v61  ;;  %v907_v11 = vpop.f32.mrb[7].mxu0 }
 0x130   :  { %943 = vst [vmem:[%s1486_s2 + $0x28] sm:$0xff] %v1044_v4  ;;  %980 = vst [vmem:[%s1486_s2 + $0xa8] sm:$0xff] %v1044_v4  ;;  %v482_v14 = vpop.f32.mrb[6].mxu1 }
 0x131   :  { %v1045_v15 = vadd.f32 %v905_v5, %v482_v14  ;;  %v484_v25 = vpop.f32.mrb[7].mxu1 }
 0x132   :  { %v1046_v26 = vadd.f32 %v907_v11, %v484_v25  ;;  %v912_v27 = vpop.f32.mrb[8].mxu0 }
 0x133   :  { %944 = vst [vmem:[%s1486_s2 + $0x30] sm:$0xff] %v1045_v15  ;;  %981 = vst [vmem:[%s1486_s2 + $0xb0] sm:$0xff] %v1045_v15  ;;  %v914_v29 = vpop.f32.mrb[9].mxu0 }
 0x134   :  { %945 = vst [vmem:[%s1486_s2 + $0x38] sm:$0xff] %v1046_v26  ;;  %982 = vst [vmem:[%s1486_s2 + $0xb8] sm:$0xff] %v1046_v26  ;;  %v490_v30 = vpop.f32.mrb[8].mxu1 }
 0x135   :  { %v1047_v31 = vadd.f32 %v912_v27, %v490_v30  ;;  %v492_v32 = vpop.f32.mrb[9].mxu1 }
 0x136   :  { %v1048_v36 = vadd.f32 %v914_v29, %v492_v32  ;;  %v919_v38 = vpop.f32.mrb[10].mxu0 }
 0x137   :  { %946 = vst [vmem:[%s1486_s2 + $0x40] sm:$0xff] %v1047_v31  ;;  %983 = vst [vmem:[%s1486_s2 + $0xc0] sm:$0xff] %v1047_v31  ;;  %v921_v39 = vpop.f32.mrb[11].mxu0 }
 0x138   :  { %947 = vst [vmem:[%s1486_s2 + $0x48] sm:$0xff] %v1048_v36  ;;  %984 = vst [vmem:[%s1486_s2 + $0xc8] sm:$0xff] %v1048_v36  ;;  %v498_v40 = vpop.f32.mrb[10].mxu1 }
 0x139   :  { %v1049_v41 = vadd.f32 %v919_v38, %v498_v40  ;;  %v500_v42 = vpop.f32.mrb[11].mxu1 }
 0x13a   :  { %v1050_v43 = vadd.f32 %v921_v39, %v500_v42  ;;  %v926_v44 = vpop.f32.mrb[12].mxu0 }
 0x13b   :  { %948 = vst [vmem:[%s1486_s2 + $0x50] sm:$0xff] %v1049_v41  ;;  %985 = vst [vmem:[%s1486_s2 + $0xd0] sm:$0xff] %v1049_v41  ;;  %v928_v45 = vpop.f32.mrb[13].mxu0 }
 0x13c   :  { %949 = vst [vmem:[%s1486_s2 + $0x58] sm:$0xff] %v1050_v43  ;;  %986 = vst [vmem:[%s1486_s2 + $0xd8] sm:$0xff] %v1050_v43  ;;  %v506_v46 = vpop.f32.mrb[12].mxu1 }
 0x13d   :  { %v1051_v47 = vadd.f32 %v926_v44, %v506_v46  ;;  %v508_v48 = vpop.f32.mrb[13].mxu1 }
 0x13e   :  { %v1052_v49 = vadd.f32 %v928_v45, %v508_v48  ;;  %v933_v51 = vpop.f32.mrb[14].mxu0 }
 0x13f   :  { %950 = vst [vmem:[%s1486_s2 + $0x60] sm:$0xff] %v1051_v47  ;;  %987 = vst [vmem:[%s1486_s2 + $0xe0] sm:$0xff] %v1051_v47  ;;  %v935_v52 = vpop.f32.mrb[15].mxu0 }
 0x140   :  { %951 = vst [vmem:[%s1486_s2 + $0x68] sm:$0xff] %v1052_v49  ;;  %988 = vst [vmem:[%s1486_s2 + $0xe8] sm:$0xff] %v1052_v49  ;;  %v514_v53 = vpop.f32.mrb[14].mxu1 }
 0x141   :  { %v1053_v54 = vadd.f32 %v933_v51, %v514_v53  ;;  %v516_v55 = vpop.f32.mrb[15].mxu1 }
 0x142   :  { %v1054_v56 = vadd.f32 %v935_v52, %v516_v55 }
 0x143   :  { %952 = vst [vmem:[%s1486_s2 + $0x70] sm:$0xff] %v1053_v54  ;;  %989 = vst [vmem:[%s1486_s2 + $0xf0] sm:$0xff] %v1053_v54 }
 0x144   :  { %953 = vst [vmem:[%s1486_s2 + $0x78] sm:$0xff] %v1054_v56  ;;  %990 = vst [vmem:[%s1486_s2 + $0xf8] sm:$0xff] %v1054_v56 }

</bundles_post_ra>
